<compile_context>
chip_gen: v5e
topology: v5e:2x2
jax: 0.10.0
libtpu: 0.0.40
codegen_flags: <defaults>
</compile_context>

<pallas_src>
import functools

import jax
import jax.numpy as jnp
from jax import lax
from jax.experimental import pallas as pl
from jax.experimental.pallas import tpu as pltpu

# ---- model hyper-parameters (globals `n_embd`, `block_size`, `dropout` in model.py)
N_EMBD = 32
N_HEADS = 4
HEAD_SIZE = N_EMBD // N_HEADS
BLOCK_SIZE = 8      # sequence length T
BATCH = 2
LN_EPS = 1e-5
NEG_INF = -1e30     # large finite negative (== -inf after softmax)


def _layer_norm(x, gamma, beta):
    # x: (N, C), gamma/beta: (1, C)
    mu = jnp.mean(x, axis=-1, keepdims=True)
    var = jnp.mean((x - mu) ** 2, axis=-1, keepdims=True)
    return (x - mu) * lax.rsqrt(var + LN_EPS) * gamma + beta


def block_kernel(x_ref, wqkv_ref, wp_ref, w1_ref, w2_ref, pvec_ref, o_ref,
                 *, seq_len, n_heads):
    bt, C = x_ref.shape                  # (B*T, C)
    hidden = w1_ref.shape[1]             # 4*C
    hs = C // n_heads

    # ---- unpack the packed row-parameter slab (static slices -> cheap views)
    b1  = pvec_ref[0:1, 0:hidden]        # (1, 4C)
    bp  = pvec_ref[1:2, 0:C]             # (1, C)
    b2  = pvec_ref[2:3, 0:C]
    g1  = pvec_ref[3:4, 0:C]
    be1 = pvec_ref[4:5, 0:C]
    g2  = pvec_ref[5:6, 0:C]
    be2 = pvec_ref[6:7, 0:C]

    x = x_ref[...].astype(jnp.float32)   # (B*T, C)

    # ---------------- self attention branch ----------------
    xn = _layer_norm(x, g1, be1)                                          # (B*T, C)

    # fused Q|K|V: single 2-D MXU matmul (BT, C) @ (C, 3C); columns are
    # [Q | K | V], each head-major (head h occupies cols h*hs:(h+1)*hs).
    qkv = jnp.dot(xn, wqkv_ref[...], preferred_element_type=jnp.float32)  # (BT, 3C)

    # block-diagonal causal mask generated in-kernel: two iotas + compares (VPU).
    row = lax.broadcasted_iota(jnp.int32, (bt, bt), 0)
    col = lax.broadcasted_iota(jnp.int32, (bt, bt), 1)
    log2_t = seq_len.bit_length() - 1
    if (1 << log2_t) == seq_len:         # power-of-two T: use a vector shift
        row_b, col_b = row >> log2_t, col >> log2_t
    else:
        row_b, col_b = row // seq_len, col // seq_len
    allowed = (row >= col) & (row_b == col_b)                             # (BT, BT)

    # NOTE: reference scales by C**-0.5 with C = n_embd (not head_size) — intentional.
    scale = float(C) ** -0.5

    # per-head attention (static unroll); head reduction folds directly into `sa`,
    # so no (H, BT, C) intermediate and no concat are ever materialized.
    sa = bp                                                               # (1, C) -> broadcasts
    for h in range(n_heads):
        q_h = qkv[:, h * hs:(h + 1) * hs]                                 # (BT, hs)
        k_h = qkv[:, C + h * hs:C + (h + 1) * hs]
        v_h = qkv[:, 2 * C + h * hs:2 * C + (h + 1) * hs]

        s = jnp.dot(q_h, k_h.T, preferred_element_type=jnp.float32) * scale
        s = jnp.where(allowed, s, NEG_INF)
        s = s - jnp.max(s, axis=-1, keepdims=True)
        p = jnp.exp(s)
        p = p / jnp.sum(p, axis=-1, keepdims=True)        # exact normalization

        pv = jnp.dot(p, v_h, preferred_element_type=jnp.float32)          # (BT, hs)
        sa = sa + jnp.dot(pv, wp_ref[h * hs:(h + 1) * hs, :],
                          preferred_element_type=jnp.float32)             # (BT, C)

    x1 = x + sa          # dropout: identity in eval mode

    # ---------------- feed-forward branch ----------------
    xn2 = _layer_norm(x1, g2, be2)
    hdn = jnp.dot(xn2, w1_ref[...], preferred_element_type=jnp.float32) + b1
    hdn = jnp.maximum(hdn, 0.0)
    ff = jnp.dot(hdn, w2_ref[...], preferred_element_type=jnp.float32) + b2
    # dropout: identity in eval mode
    o_ref[...] = (x1 + ff).astype(o_ref.dtype)


def prepare_params(params, n_heads=N_HEADS):
    """One-time weight repacking, hoisted OUT of the per-call jitted path."""
    C = params["wq"].shape[0]
    hidden = params["w1"].shape[1]
    # fused QKV weight: (C, 3C), columns [Q | K | V], head-major inside each block
    wqkv = jnp.concatenate([params["wq"], params["wk"], params["wv"]], axis=1)

    pad_w = ((max(hidden, C) + 127) // 128) * 128

    def row(v):
        v = jnp.asarray(v, jnp.float32).reshape(1, -1)
        return jnp.pad(v, ((0, 0), (0, pad_w - v.shape[1])))

    # packed row-parameter slab: 7 data rows + 1 pad row  -> (8, 128) = one vreg
    pvec = jnp.concatenate(
        [row(params[k]) for k in ("b1", "bp", "b2", "g1", "be1", "g2", "be2")]
        + [jnp.zeros((1, pad_w), jnp.float32)], axis=0)

    return {"wqkv": wqkv, "wp": params["wp"], "w1": params["w1"],
            "w2": params["w2"], "pvec": pvec}


@jax.jit
def transformer_block(x, prep):
    B, T, C = x.shape
    vmem = pl.BlockSpec(memory_space=pltpu.MemorySpace.VMEM)
    kernel = functools.partial(block_kernel, seq_len=T, n_heads=N_HEADS)

    # Whole problem (< 100 KB) lives in VMEM for a single grid-free step; no
    # vmem_limit_bytes / tiling needed on v5e/v6e/v7x.
    out2d = pl.pallas_call(
        kernel,
        out_shape=jax.ShapeDtypeStruct((B * T, C), x.dtype),
        in_specs=[vmem] * 6,
        out_specs=vmem,
    )(x.reshape(B * T, C), prep["wqkv"], prep["wp"], prep["w1"], prep["w2"],
      prep["pvec"])

    # 2-D (B*T, C) slab kept through the kernel; reshape only at the boundary.
    return out2d.reshape(B, T, C)


# ---------------- pure-JAX reference for validation ----------------
def reference_block(x, p):
    def ln(v, g, b):
        mu = jnp.mean(v, axis=-1, keepdims=True)
        var = jnp.mean((v - mu) ** 2, axis=-1, keepdims=True)
        return (v - mu) * lax.rsqrt(var + LN_EPS) * g + b

    B, T, C = x.shape
    hs = C // N_HEADS
    xn = ln(x, p["g1"][0], p["be1"][0])
    q = xn @ p["wq"]
    k = xn @ p["wk"]
    v = xn @ p["wv"]
    outs = []
    mask = jnp.tril(jnp.ones((T, T), bool))
    for h in range(N_HEADS):
        s = h * hs
        wei = (q[..., s:s + hs] @ jnp.swapaxes(k[..., s:s + hs], -1, -2)) * (C ** -0.5)
        wei = jnp.where(mask, wei, -jnp.inf)
        wei = jax.nn.softmax(wei, axis=-1)
        outs.append(wei @ v[..., s:s + hs])
    sa = jnp.concatenate(outs, axis=-1) @ p["wp"] + p["bp"][0]
    x1 = x + sa
    xn2 = ln(x1, p["g2"][0], p["be2"][0])
    ff = jnp.maximum(xn2 @ p["w1"] + p["b1"][0], 0.0) @ p["w2"] + p["b2"][0]
    return x1 + ff


def init_params(key, n_embd):
    H = 4 * n_embd
    ks = jax.random.split(key, 8)
    sc = 0.1
    return {
        "wq": sc * jax.random.normal(ks[0], (n_embd, n_embd), jnp.float32),
        "wk": sc * jax.random.normal(ks[1], (n_embd, n_embd), jnp.float32),
        "wv": sc * jax.random.normal(ks[2], (n_embd, n_embd), jnp.float32),
        "wp": sc * jax.random.normal(ks[3], (n_embd, n_embd), jnp.float32),
        "bp": sc * jax.random.normal(ks[4], (1, n_embd), jnp.float32),
        "w1": sc * jax.random.normal(ks[5], (n_embd, H), jnp.float32),
        "b1": sc * jax.random.normal(ks[6], (1, H), jnp.float32),
        "w2": sc * jax.random.normal(ks[7], (H, n_embd), jnp.float32),
        "b2": jnp.zeros((1, n_embd), jnp.float32),
        "g1": jnp.ones((1, n_embd), jnp.float32),
        "be1": jnp.zeros((1, n_embd), jnp.float32),
        "g2": jnp.ones((1, n_embd), jnp.float32),
        "be2": jnp.zeros((1, n_embd), jnp.float32),
    }


if __name__ == "__main__":
    key = jax.random.PRNGKey(0)
    kx, kp = jax.random.split(key)
    x = jax.random.normal(kx, (BATCH, BLOCK_SIZE, N_EMBD), jnp.float32)
    params = init_params(kp, N_EMBD)

    prep = prepare_params(params)          # one-time repack, outside jit / hot path
    out = jax.block_until_ready(transformer_block(x, prep))
    ref = reference_block(x, params)

    assert out.shape == (BATCH, BLOCK_SIZE, N_EMBD)
    assert jnp.allclose(out, ref, atol=1e-4, rtol=1e-4), "mismatch vs reference"
    print("KERNEL_OK")
</pallas_src>

<mosaic_0001>
module attributes {stable_mosaic.version = 11 : i64} {
  func.func @block_kernel(%arg0: memref<16x32xf32, #tpu.memory_space<vmem>>, %arg1: memref<32x96xf32, #tpu.memory_space<vmem>>, %arg2: memref<32x32xf32, #tpu.memory_space<vmem>>, %arg3: memref<32x128xf32, #tpu.memory_space<vmem>>, %arg4: memref<128x32xf32, #tpu.memory_space<vmem>>, %arg5: memref<8x128xf32, #tpu.memory_space<vmem>>, %arg6: memref<16x32xf32, #tpu.memory_space<vmem>>) attributes {dimension_semantics = [], scalar_prefetch = 0 : i64, scratch_operands = 0 : i64, tpu.core_type = #tpu.core_type<tc>} {
    %c0 = arith.constant 0 : index
    %c0_0 = arith.constant 0 : index
    %0 = vector.load %arg5[%c0, %c0_0] : memref<8x128xf32, #tpu.memory_space<vmem>>, vector<1x128xf32>
    %c1 = arith.constant 1 : index
    %c0_1 = arith.constant 0 : index
    %1 = vector.load %arg5[%c1, %c0_1] : memref<8x128xf32, #tpu.memory_space<vmem>>, vector<1x32xf32>
    %c2 = arith.constant 2 : index
    %c0_2 = arith.constant 0 : index
    %2 = vector.load %arg5[%c2, %c0_2] : memref<8x128xf32, #tpu.memory_space<vmem>>, vector<1x32xf32>
    %c3 = arith.constant 3 : index
    %c0_3 = arith.constant 0 : index
    %3 = vector.load %arg5[%c3, %c0_3] : memref<8x128xf32, #tpu.memory_space<vmem>>, vector<1x32xf32>
    %c4 = arith.constant 4 : index
    %c0_4 = arith.constant 0 : index
    %4 = vector.load %arg5[%c4, %c0_4] : memref<8x128xf32, #tpu.memory_space<vmem>>, vector<1x32xf32>
    %c5 = arith.constant 5 : index
    %c0_5 = arith.constant 0 : index
    %5 = vector.load %arg5[%c5, %c0_5] : memref<8x128xf32, #tpu.memory_space<vmem>>, vector<1x32xf32>
    %c6 = arith.constant 6 : index
    %c0_6 = arith.constant 0 : index
    %6 = vector.load %arg5[%c6, %c0_6] : memref<8x128xf32, #tpu.memory_space<vmem>>, vector<1x32xf32>
    %c0_7 = arith.constant 0 : index
    %c0_8 = arith.constant 0 : index
    %7 = vector.load %arg0[%c0_7, %c0_8] : memref<16x32xf32, #tpu.memory_space<vmem>>, vector<16x32xf32>
    %cst = arith.constant dense<0.000000e+00> : vector<16xf32>
    %8 = vector.multi_reduction <add>, %7, %cst [1] : vector<16x32xf32> to vector<16xf32>
    %9 = vector.shape_cast %8 : vector<16xf32> to vector<16x1xf32>
    %cst_9 = arith.constant 3.200000e+01 : f32
    %10 = vector.broadcast %cst_9 : f32 to vector<16x1xf32>
    %11 = arith.divf %9, %10 : vector<16x1xf32>
    %12 = vector.broadcast %11 : vector<16x1xf32> to vector<16x32xf32>
    %13 = arith.subf %7, %12 : vector<16x32xf32>
    %14 = arith.mulf %13, %13 : vector<16x32xf32>
    %cst_10 = arith.constant dense<0.000000e+00> : vector<16xf32>
    %15 = vector.multi_reduction <add>, %14, %cst_10 [1] : vector<16x32xf32> to vector<16xf32>
    %16 = vector.shape_cast %15 : vector<16xf32> to vector<16x1xf32>
    %cst_11 = arith.constant 3.200000e+01 : f32
    %17 = vector.broadcast %cst_11 : f32 to vector<16x1xf32>
    %18 = arith.divf %16, %17 : vector<16x1xf32>
    %19 = vector.broadcast %11 : vector<16x1xf32> to vector<16x32xf32>
    %20 = arith.subf %7, %19 : vector<16x32xf32>
    %cst_12 = arith.constant 9.99999974E-6 : f32
    %21 = vector.broadcast %cst_12 : f32 to vector<16x1xf32>
    %22 = arith.addf %18, %21 : vector<16x1xf32>
    %23 = math.rsqrt %22 : vector<16x1xf32>
    %24 = vector.broadcast %23 : vector<16x1xf32> to vector<16x32xf32>
    %25 = arith.mulf %20, %24 : vector<16x32xf32>
    %26 = vector.broadcast %3 : vector<1x32xf32> to vector<16x32xf32>
    %27 = arith.mulf %25, %26 : vector<16x32xf32>
    %28 = vector.broadcast %4 : vector<1x32xf32> to vector<16x32xf32>
    %29 = arith.addf %27, %28 : vector<16x32xf32>
    %c0_13 = arith.constant 0 : index
    %c0_14 = arith.constant 0 : index
    %30 = vector.load %arg1[%c0_13, %c0_14] : memref<32x96xf32, #tpu.memory_space<vmem>>, vector<32x96xf32>
    %cst_15 = arith.constant dense<0.000000e+00> : vector<16x96xf32>
    %31 = tpu.matmul %29, %30, %cst_15 {dimension_numbers = #tpu.dot_dimension_numbers<[1], [0], [0], [1], [0, 0, 1, 1], [], []>} : vector<16x32xf32>, vector<32x96xf32>, vector<16x96xf32> -> vector<16x96xf32>
    %32 = tpu.iota {dimensions = array<i32: 0>} : vector<16x16xi32>
    %33 = tpu.iota {dimensions = array<i32: 1>} : vector<16x16xi32>
    %c3_i32 = arith.constant 3 : i32
    %34 = vector.broadcast %c3_i32 : i32 to vector<16x16xi32>
    %35 = arith.shrsi %32, %34 : vector<16x16xi32>
    %c3_i32_16 = arith.constant 3 : i32
    %36 = vector.broadcast %c3_i32_16 : i32 to vector<16x16xi32>
    %37 = arith.shrsi %33, %36 : vector<16x16xi32>
    %38 = arith.cmpi sge, %32, %33 : vector<16x16xi32>
    %39 = arith.cmpi eq, %35, %37 : vector<16x16xi32>
    %40 = arith.andi %38, %39 : vector<16x16xi1>
    %41 = vector.extract_strided_slice %31 {offsets = [0, 0], sizes = [16, 8], strides = [1, 1]} : vector<16x96xf32> to vector<16x8xf32>
    %42 = vector.extract_strided_slice %31 {offsets = [0, 32], sizes = [16, 8], strides = [1, 1]} : vector<16x96xf32> to vector<16x8xf32>
    %43 = vector.extract_strided_slice %31 {offsets = [0, 64], sizes = [16, 8], strides = [1, 1]} : vector<16x96xf32> to vector<16x8xf32>
    %44 = tpu.transpose %42, [1, 0] : vector<16x8xf32> -> vector<8x16xf32>
    %cst_17 = arith.constant dense<0.000000e+00> : vector<16x16xf32>
    %45 = tpu.matmul %41, %44, %cst_17 {dimension_numbers = #tpu.dot_dimension_numbers<[1], [0], [0], [1], [0, 0, 1, 1], [], []>} : vector<16x8xf32>, vector<8x16xf32>, vector<16x16xf32> -> vector<16x16xf32>
    %cst_18 = arith.constant 0.176776692 : f32
    %46 = vector.broadcast %cst_18 : f32 to vector<16x16xf32>
    %47 = arith.mulf %45, %46 : vector<16x16xf32>
    %cst_19 = arith.constant -1.000000e+30 : f32
    %48 = vector.broadcast %cst_19 : f32 to vector<16x16xf32>
    %49 = arith.select %40, %47, %48 : vector<16x16xi1>, vector<16x16xf32>
    %cst_20 = arith.constant dense<0xFF800000> : vector<16xf32>
    %50 = vector.multi_reduction <maximumf>, %49, %cst_20 [1] : vector<16x16xf32> to vector<16xf32>
    %51 = vector.shape_cast %50 : vector<16xf32> to vector<16x1xf32>
    %52 = vector.broadcast %51 : vector<16x1xf32> to vector<16x16xf32>
    %53 = arith.subf %49, %52 : vector<16x16xf32>
    %54 = math.exp %53 : vector<16x16xf32>
    %cst_21 = arith.constant dense<0.000000e+00> : vector<16xf32>
    %55 = vector.multi_reduction <add>, %54, %cst_21 [1] : vector<16x16xf32> to vector<16xf32>
    %56 = vector.shape_cast %55 : vector<16xf32> to vector<16x1xf32>
    %57 = vector.broadcast %56 : vector<16x1xf32> to vector<16x16xf32>
    %58 = arith.divf %54, %57 : vector<16x16xf32>
    %cst_22 = arith.constant dense<0.000000e+00> : vector<16x8xf32>
    %59 = tpu.matmul %58, %43, %cst_22 {dimension_numbers = #tpu.dot_dimension_numbers<[1], [0], [0], [1], [0, 0, 1, 1], [], []>} : vector<16x16xf32>, vector<16x8xf32>, vector<16x8xf32> -> vector<16x8xf32>
    %c0_23 = arith.constant 0 : index
    %c0_24 = arith.constant 0 : index
    %60 = vector.load %arg2[%c0_23, %c0_24] : memref<32x32xf32, #tpu.memory_space<vmem>>, vector<8x32xf32>
    %cst_25 = arith.constant dense<0.000000e+00> : vector<16x32xf32>
    %61 = tpu.matmul %59, %60, %cst_25 {dimension_numbers = #tpu.dot_dimension_numbers<[1], [0], [0], [1], [0, 0, 1, 1], [], []>} : vector<16x8xf32>, vector<8x32xf32>, vector<16x32xf32> -> vector<16x32xf32>
    %62 = vector.broadcast %1 : vector<1x32xf32> to vector<16x32xf32>
    %63 = arith.addf %62, %61 : vector<16x32xf32>
    %64 = vector.extract_strided_slice %31 {offsets = [0, 8], sizes = [16, 8], strides = [1, 1]} : vector<16x96xf32> to vector<16x8xf32>
    %65 = vector.extract_strided_slice %31 {offsets = [0, 40], sizes = [16, 8], strides = [1, 1]} : vector<16x96xf32> to vector<16x8xf32>
    %66 = vector.extract_strided_slice %31 {offsets = [0, 72], sizes = [16, 8], strides = [1, 1]} : vector<16x96xf32> to vector<16x8xf32>
    %67 = tpu.transpose %65, [1, 0] : vector<16x8xf32> -> vector<8x16xf32>
    %cst_26 = arith.constant dense<0.000000e+00> : vector<16x16xf32>
    %68 = tpu.matmul %64, %67, %cst_26 {dimension_numbers = #tpu.dot_dimension_numbers<[1], [0], [0], [1], [0, 0, 1, 1], [], []>} : vector<16x8xf32>, vector<8x16xf32>, vector<16x16xf32> -> vector<16x16xf32>
    %cst_27 = arith.constant 0.176776692 : f32
    %69 = vector.broadcast %cst_27 : f32 to vector<16x16xf32>
    %70 = arith.mulf %68, %69 : vector<16x16xf32>
    %cst_28 = arith.constant -1.000000e+30 : f32
    %71 = vector.broadcast %cst_28 : f32 to vector<16x16xf32>
    %72 = arith.select %40, %70, %71 : vector<16x16xi1>, vector<16x16xf32>
    %cst_29 = arith.constant dense<0xFF800000> : vector<16xf32>
    %73 = vector.multi_reduction <maximumf>, %72, %cst_29 [1] : vector<16x16xf32> to vector<16xf32>
    %74 = vector.shape_cast %73 : vector<16xf32> to vector<16x1xf32>
    %75 = vector.broadcast %74 : vector<16x1xf32> to vector<16x16xf32>
    %76 = arith.subf %72, %75 : vector<16x16xf32>
    %77 = math.exp %76 : vector<16x16xf32>
    %cst_30 = arith.constant dense<0.000000e+00> : vector<16xf32>
    %78 = vector.multi_reduction <add>, %77, %cst_30 [1] : vector<16x16xf32> to vector<16xf32>
    %79 = vector.shape_cast %78 : vector<16xf32> to vector<16x1xf32>
    %80 = vector.broadcast %79 : vector<16x1xf32> to vector<16x16xf32>
    %81 = arith.divf %77, %80 : vector<16x16xf32>
    %cst_31 = arith.constant dense<0.000000e+00> : vector<16x8xf32>
    %82 = tpu.matmul %81, %66, %cst_31 {dimension_numbers = #tpu.dot_dimension_numbers<[1], [0], [0], [1], [0, 0, 1, 1], [], []>} : vector<16x16xf32>, vector<16x8xf32>, vector<16x8xf32> -> vector<16x8xf32>
    %c8 = arith.constant 8 : index
    %c0_32 = arith.constant 0 : index
    %83 = vector.load %arg2[%c8, %c0_32] : memref<32x32xf32, #tpu.memory_space<vmem>>, vector<8x32xf32>
    %cst_33 = arith.constant dense<0.000000e+00> : vector<16x32xf32>
    %84 = tpu.matmul %82, %83, %cst_33 {dimension_numbers = #tpu.dot_dimension_numbers<[1], [0], [0], [1], [0, 0, 1, 1], [], []>} : vector<16x8xf32>, vector<8x32xf32>, vector<16x32xf32> -> vector<16x32xf32>
    %85 = arith.addf %63, %84 : vector<16x32xf32>
    %86 = vector.extract_strided_slice %31 {offsets = [0, 16], sizes = [16, 8], strides = [1, 1]} : vector<16x96xf32> to vector<16x8xf32>
    %87 = vector.extract_strided_slice %31 {offsets = [0, 48], sizes = [16, 8], strides = [1, 1]} : vector<16x96xf32> to vector<16x8xf32>
    %88 = vector.extract_strided_slice %31 {offsets = [0, 80], sizes = [16, 8], strides = [1, 1]} : vector<16x96xf32> to vector<16x8xf32>
    %89 = tpu.transpose %87, [1, 0] : vector<16x8xf32> -> vector<8x16xf32>
    %cst_34 = arith.constant dense<0.000000e+00> : vector<16x16xf32>
    %90 = tpu.matmul %86, %89, %cst_34 {dimension_numbers = #tpu.dot_dimension_numbers<[1], [0], [0], [1], [0, 0, 1, 1], [], []>} : vector<16x8xf32>, vector<8x16xf32>, vector<16x16xf32> -> vector<16x16xf32>
    %cst_35 = arith.constant 0.176776692 : f32
    %91 = vector.broadcast %cst_35 : f32 to vector<16x16xf32>
    %92 = arith.mulf %90, %91 : vector<16x16xf32>
    %cst_36 = arith.constant -1.000000e+30 : f32
    %93 = vector.broadcast %cst_36 : f32 to vector<16x16xf32>
    %94 = arith.select %40, %92, %93 : vector<16x16xi1>, vector<16x16xf32>
    %cst_37 = arith.constant dense<0xFF800000> : vector<16xf32>
    %95 = vector.multi_reduction <maximumf>, %94, %cst_37 [1] : vector<16x16xf32> to vector<16xf32>
    %96 = vector.shape_cast %95 : vector<16xf32> to vector<16x1xf32>
    %97 = vector.broadcast %96 : vector<16x1xf32> to vector<16x16xf32>
    %98 = arith.subf %94, %97 : vector<16x16xf32>
    %99 = math.exp %98 : vector<16x16xf32>
    %cst_38 = arith.constant dense<0.000000e+00> : vector<16xf32>
    %100 = vector.multi_reduction <add>, %99, %cst_38 [1] : vector<16x16xf32> to vector<16xf32>
    %101 = vector.shape_cast %100 : vector<16xf32> to vector<16x1xf32>
    %102 = vector.broadcast %101 : vector<16x1xf32> to vector<16x16xf32>
    %103 = arith.divf %99, %102 : vector<16x16xf32>
    %cst_39 = arith.constant dense<0.000000e+00> : vector<16x8xf32>
    %104 = tpu.matmul %103, %88, %cst_39 {dimension_numbers = #tpu.dot_dimension_numbers<[1], [0], [0], [1], [0, 0, 1, 1], [], []>} : vector<16x16xf32>, vector<16x8xf32>, vector<16x8xf32> -> vector<16x8xf32>
    %c16 = arith.constant 16 : index
    %c0_40 = arith.constant 0 : index
    %105 = vector.load %arg2[%c16, %c0_40] : memref<32x32xf32, #tpu.memory_space<vmem>>, vector<8x32xf32>
    %cst_41 = arith.constant dense<0.000000e+00> : vector<16x32xf32>
    %106 = tpu.matmul %104, %105, %cst_41 {dimension_numbers = #tpu.dot_dimension_numbers<[1], [0], [0], [1], [0, 0, 1, 1], [], []>} : vector<16x8xf32>, vector<8x32xf32>, vector<16x32xf32> -> vector<16x32xf32>
    %107 = arith.addf %85, %106 : vector<16x32xf32>
    %108 = vector.extract_strided_slice %31 {offsets = [0, 24], sizes = [16, 8], strides = [1, 1]} : vector<16x96xf32> to vector<16x8xf32>
    %109 = vector.extract_strided_slice %31 {offsets = [0, 56], sizes = [16, 8], strides = [1, 1]} : vector<16x96xf32> to vector<16x8xf32>
    %110 = vector.extract_strided_slice %31 {offsets = [0, 88], sizes = [16, 8], strides = [1, 1]} : vector<16x96xf32> to vector<16x8xf32>
    %111 = tpu.transpose %109, [1, 0] : vector<16x8xf32> -> vector<8x16xf32>
    %cst_42 = arith.constant dense<0.000000e+00> : vector<16x16xf32>
    %112 = tpu.matmul %108, %111, %cst_42 {dimension_numbers = #tpu.dot_dimension_numbers<[1], [0], [0], [1], [0, 0, 1, 1], [], []>} : vector<16x8xf32>, vector<8x16xf32>, vector<16x16xf32> -> vector<16x16xf32>
    %cst_43 = arith.constant 0.176776692 : f32
    %113 = vector.broadcast %cst_43 : f32 to vector<16x16xf32>
    %114 = arith.mulf %112, %113 : vector<16x16xf32>
    %cst_44 = arith.constant -1.000000e+30 : f32
    %115 = vector.broadcast %cst_44 : f32 to vector<16x16xf32>
    %116 = arith.select %40, %114, %115 : vector<16x16xi1>, vector<16x16xf32>
    %cst_45 = arith.constant dense<0xFF800000> : vector<16xf32>
    %117 = vector.multi_reduction <maximumf>, %116, %cst_45 [1] : vector<16x16xf32> to vector<16xf32>
    %118 = vector.shape_cast %117 : vector<16xf32> to vector<16x1xf32>
    %119 = vector.broadcast %118 : vector<16x1xf32> to vector<16x16xf32>
    %120 = arith.subf %116, %119 : vector<16x16xf32>
    %121 = math.exp %120 : vector<16x16xf32>
    %cst_46 = arith.constant dense<0.000000e+00> : vector<16xf32>
    %122 = vector.multi_reduction <add>, %121, %cst_46 [1] : vector<16x16xf32> to vector<16xf32>
    %123 = vector.shape_cast %122 : vector<16xf32> to vector<16x1xf32>
    %124 = vector.broadcast %123 : vector<16x1xf32> to vector<16x16xf32>
    %125 = arith.divf %121, %124 : vector<16x16xf32>
    %cst_47 = arith.constant dense<0.000000e+00> : vector<16x8xf32>
    %126 = tpu.matmul %125, %110, %cst_47 {dimension_numbers = #tpu.dot_dimension_numbers<[1], [0], [0], [1], [0, 0, 1, 1], [], []>} : vector<16x16xf32>, vector<16x8xf32>, vector<16x8xf32> -> vector<16x8xf32>
    %c24 = arith.constant 24 : index
    %c0_48 = arith.constant 0 : index
    %127 = vector.load %arg2[%c24, %c0_48] : memref<32x32xf32, #tpu.memory_space<vmem>>, vector<8x32xf32>
    %cst_49 = arith.constant dense<0.000000e+00> : vector<16x32xf32>
    %128 = tpu.matmul %126, %127, %cst_49 {dimension_numbers = #tpu.dot_dimension_numbers<[1], [0], [0], [1], [0, 0, 1, 1], [], []>} : vector<16x8xf32>, vector<8x32xf32>, vector<16x32xf32> -> vector<16x32xf32>
    %129 = arith.addf %107, %128 : vector<16x32xf32>
    %130 = arith.addf %7, %129 : vector<16x32xf32>
    %cst_50 = arith.constant dense<0.000000e+00> : vector<16xf32>
    %131 = vector.multi_reduction <add>, %130, %cst_50 [1] : vector<16x32xf32> to vector<16xf32>
    %132 = vector.shape_cast %131 : vector<16xf32> to vector<16x1xf32>
    %cst_51 = arith.constant 3.200000e+01 : f32
    %133 = vector.broadcast %cst_51 : f32 to vector<16x1xf32>
    %134 = arith.divf %132, %133 : vector<16x1xf32>
    %135 = vector.broadcast %134 : vector<16x1xf32> to vector<16x32xf32>
    %136 = arith.subf %130, %135 : vector<16x32xf32>
    %137 = arith.mulf %136, %136 : vector<16x32xf32>
    %cst_52 = arith.constant dense<0.000000e+00> : vector<16xf32>
    %138 = vector.multi_reduction <add>, %137, %cst_52 [1] : vector<16x32xf32> to vector<16xf32>
    %139 = vector.shape_cast %138 : vector<16xf32> to vector<16x1xf32>
    %cst_53 = arith.constant 3.200000e+01 : f32
    %140 = vector.broadcast %cst_53 : f32 to vector<16x1xf32>
    %141 = arith.divf %139, %140 : vector<16x1xf32>
    %142 = vector.broadcast %134 : vector<16x1xf32> to vector<16x32xf32>
    %143 = arith.subf %130, %142 : vector<16x32xf32>
    %cst_54 = arith.constant 9.99999974E-6 : f32
    %144 = vector.broadcast %cst_54 : f32 to vector<16x1xf32>
    %145 = arith.addf %141, %144 : vector<16x1xf32>
    %146 = math.rsqrt %145 : vector<16x1xf32>
    %147 = vector.broadcast %146 : vector<16x1xf32> to vector<16x32xf32>
    %148 = arith.mulf %143, %147 : vector<16x32xf32>
    %149 = vector.broadcast %5 : vector<1x32xf32> to vector<16x32xf32>
    %150 = arith.mulf %148, %149 : vector<16x32xf32>
    %151 = vector.broadcast %6 : vector<1x32xf32> to vector<16x32xf32>
    %152 = arith.addf %150, %151 : vector<16x32xf32>
    %c0_55 = arith.constant 0 : index
    %c0_56 = arith.constant 0 : index
    %153 = vector.load %arg3[%c0_55, %c0_56] : memref<32x128xf32, #tpu.memory_space<vmem>>, vector<32x128xf32>
    %cst_57 = arith.constant dense<0.000000e+00> : vector<16x128xf32>
    %154 = tpu.matmul %152, %153, %cst_57 {dimension_numbers = #tpu.dot_dimension_numbers<[1], [0], [0], [1], [0, 0, 1, 1], [], []>} : vector<16x32xf32>, vector<32x128xf32>, vector<16x128xf32> -> vector<16x128xf32>
    %155 = vector.broadcast %0 : vector<1x128xf32> to vector<16x128xf32>
    %156 = arith.addf %154, %155 : vector<16x128xf32>
    %cst_58 = arith.constant 0.000000e+00 : f32
    %157 = vector.broadcast %cst_58 : f32 to vector<16x128xf32>
    %158 = arith.maximumf %156, %157 : vector<16x128xf32>
    %c0_59 = arith.constant 0 : index
    %c0_60 = arith.constant 0 : index
    %159 = vector.load %arg4[%c0_59, %c0_60] : memref<128x32xf32, #tpu.memory_space<vmem>>, vector<128x32xf32>
    %cst_61 = arith.constant dense<0.000000e+00> : vector<16x32xf32>
    %160 = tpu.matmul %158, %159, %cst_61 {dimension_numbers = #tpu.dot_dimension_numbers<[1], [0], [0], [1], [0, 0, 1, 1], [], []>} : vector<16x128xf32>, vector<128x32xf32>, vector<16x32xf32> -> vector<16x32xf32>
    %161 = vector.broadcast %2 : vector<1x32xf32> to vector<16x32xf32>
    %162 = arith.addf %160, %161 : vector<16x32xf32>
    %163 = arith.addf %130, %162 : vector<16x32xf32>
    %c0_62 = arith.constant 0 : index
    %c0_63 = arith.constant 0 : index
    %164 = vector.load %arg6[%c0_62, %c0_63] : memref<16x32xf32, #tpu.memory_space<vmem>>, vector<16x32xf32>
    tpu.vector_store %arg6[%c0_62, %c0_63], %163 {strides = array<i32>} : memref<16x32xf32, #tpu.memory_space<vmem>>, vector<16x32xf32>,
    return
  }
}

</mosaic_0001>

<bundles_post_ra>
// kernel: transformer_block.1
= control target key start
LH: loop header
LB: loop body
LE: loop exit
PB: predicated region body
PF: predicated region fallthrough
CT: control target
= control target key end

     0   :  { %vm33_vm0 = vcmask 261120   ;;  %s1400_s0 = inlined_call_operand.vmem [shape: f32[16,32], index: 0, kind: input, shape index: {}]   ;;  %s1401_s1 = inlined_call_operand.vmem [shape: f32[32,96], index: 1, kind: input, shape index: {}]   ;;  %s1402_s2 = inlined_call_operand.vmem [shape: f32[32,32], index: 2, kind: input, shape index: {}]   ;;  %s1403_s3 = inlined_call_operand.vmem [shape: f32[32,128], index: 3, kind: input, shape index: {}]   ;;  %s1404_s4 = inlined_call_operand.vmem [shape: f32[128,32], index: 4, kind: input, shape index: {}]   ;;  %s1405_s5 = inlined_call_operand.vmem [shape: f32[8,128], index: 5, kind: input, shape index: {}]   ;;  %s1406_s6 = inlined_call_operand.hbm [shape: f32[16,32], index: 6, kind: output, shape index: {}]  }
   0x1   :  { %v1120_v0 = vld [vmem:[%s1400_s0] sm:$0xff] }
   0x2   :  { %v34_v1 = vsel %vm33_vm0, %v1120_v0, 0.0 }
   0x3   :  { %35 = vadd.xlane.f32.xlu0 %v34_v1 }
   0x4   :  { %11 = vsyncpa [#allocation3], 0  ;;  %v1127_v2 = vld [vmem:[%s1400_s0 + $0x8] sm:$0xff]  ;;  %v1067_v4 = vmov 32.0   ;;  %v94_v21 = vld [vmem:[%s1401_s1 + $0x18] sm:$0xff]  ;;  %s1068_s11 = smov 96   ;;  %v124_v57 = vlaneseq }
   0x5   :  { %v37_v3 = vsel %vm33_vm0, %v1127_v2, 0.0  ;;  %999 = vrcp.f32 %v1067_v4  ;;  %113 = vmatpush.msra.mxu1 %v94_v21  ;;  %v93_v22 = vld [vmem:[%s1401_s1 + $0x10] sm:$0xff]  ;;  %v92_v23 = vld [vmem:[%s1401_s1 + $0x8] sm:$0xff]  ;;  %v91_v24 = vld [vmem:[%s1401_s1] sm:$0xff]  ;;  %vm144_vm8 = vcmask 64512   ;;  %vm180_vm12 = vcmask 130048  }
   0x6   :  { %v992_v39 = vld [vmem:[%s1405_s5 + $0x3] ss:$0 sm:$0xff]  ;;  %v993_v43 = vld [vmem:[%s1405_s5 + $0x4] ss:$0 sm:$0xff]  ;;  %v125_v58 = vshrl.u32 %v124_v57, 7  ;;  %v128_v59 = vand.u32 127, %v124_v57 }
   0x7   :  { %114 = vmatpush.msra.mxu1 %v93_v22  ;;  %s1069_s12 = smov 64   ;;  %s1070_s13 = smov 88  }
   0x8   :  { %v129_v60 = vshra.s32 %v125_v58, 3  ;;  %v131_v61 = vshra.s32 %v128_v59, 3  ;;  %vm132_vm9 = vcmp.ge.s32.totalorder %v125_v58, %v128_v59  ;;  %v126_v62 = vadd.s32 8, %v125_v58  ;;  %s1071_s14 = smov 120   ;;  %s1072_s17 = smov 80  }
   0x9   :  { %115 = vmatpush.msra.mxu1 %v92_v23  ;;  %s1073_s18 = smov 104   ;;  %s1074_s19 = smov 72  }
   0xa   :  { %vm134_vm10 = vcmp.eq.s32.totalorder %v129_v60, %v131_v61  ;;  %v130_v4 = vshra.s32 %v126_v62, 3  ;;  %vm133_vm13 = vcmp.ge.s32.totalorder %v126_v62, %v128_v59  ;;  %s1075_s20 = smov 56   ;;  %s1076_s21 = smov 112  }
   0xb   :  { %38 = vadd.xlane.f32.xlu0 %v37_v3  ;;  %v1000_v5 = vpop.eup %999  ;;  %116 = vmatpush.msra.mxu1 %v91_v24  ;;  %vm1173_vm11 = vmand %vm132_vm9, %vm134_vm10  ;;  %s1077_s25 = smov 48   ;;  %s1078_s26 = smov 40  }
   0xc   :  { %v41_v6 = vmul.f32 32.0, %v1000_v5  ;;  %vm45_vm1 = vweird.f32 %v1000_v5  ;;  %vm135_vm14 = vcmp.eq.s32.totalorder %v130_v4, %v131_v61  ;;  %s1081_s27 = smov 8  }
   0xd   :  { %vm1180_vm15 = vmand %vm133_vm13, %vm135_vm14 }
   0xe   :  { %v42_v7 = vsub.f32 1.0, %v41_v6 }
  0x10   :  { %v43_v8 = vmul.f32 %v1000_v5, %v42_v7 }
  0x12   :  { %v44_v9 = vadd.f32 %v1000_v5, %v43_v8 }
  0x14   :  { %v1131_v10 = vsel %vm45_vm1, %v1000_v5, %v44_v9 }
  0x76   :  { %v36_v11 = vpop.xlane.xlu0 %35 }
  0x77   :  { %v47_v12 = vmul.f32 %v1131_v10, %v36_v11 }
  0x79   :  { %v49_v13 = vsub.f32 %v1120_v0, %v47_v12 }
  0x7b   :  { %v51_v14 = vmul.f32 %v49_v13, %v49_v13 }
  0x7d   :  { %v53_v15 = vsel %vm33_vm0, %v51_v14, 0.0 }
  0x7e   :  { %54 = vadd.xlane.f32.xlu1 %v53_v15  ;;  %v39_v16 = vpop.xlane.xlu0 %38 }
  0x7f   :  { %v48_v17 = vmul.f32 %v1131_v10, %v39_v16 }
  0x81   :  { %v50_v18 = vsub.f32 %v1127_v2, %v48_v17 }
  0x83   :  { %v52_v19 = vmul.f32 %v50_v18, %v50_v18 }
  0x85   :  { %v56_v20 = vsel %vm33_vm0, %v52_v19, 0.0 }
  0x86   :  { %57 = vadd.xlane.f32.xlu1 %v56_v20 }
  0xf1   :  { %v55_v25 = vpop.xlane.xlu1 %54 }
  0xf2   :  { %v59_v26 = vmul.f32 %v55_v25, %v1131_v10 }
  0xf4   :  { %v61_v27 = vadd.f32 1e-05, %v59_v26 }
  0xf6   :  { %1001 = vrsqrt.f32 %v61_v27  ;;  %vm69_vm3 = vweird.f32 %v61_v27 }
  0xf9   :  { %v58_v28 = vpop.xlane.xlu1 %57 }
  0xfa   :  { %v60_v29 = vmul.f32 %v58_v28, %v1131_v10 }
  0xfc   :  { %v1002_v30 = vpop.eup %1001  ;;  %v62_v31 = vadd.f32 1e-05, %v60_v29 }
  0xfd   :  { %v64_v32 = vmul.f32 %v1002_v30, %v61_v27  ;;  %vm70_vm2 = vweird.f32 %v1002_v30  ;;  %v264_v27 = vld [vmem:[%s1402_s2] sm:$0xff] }
  0xfe   :  { %1003 = vrsqrt.f32 %v62_v31  ;;  %vm71_vm4 = vmor %vm69_vm3, %vm70_vm2  ;;  %vm79_vm6 = vweird.f32 %v62_v31  ;;  %286 = vmatpush.msra.mxu3 %v264_v27 }
  0xff   :  { %v65_v33 = vmul.f32 %v1002_v30, %v64_v32 }
 0x101   :  { %v66_v34 = vmul.f32 0.5, %v65_v33 }
 0x103   :  { %v67_v35 = vsub.f32 1.5, %v66_v34 }
 0x104   :  { %v1004_v36 = vpop.eup %1003 }
 0x105   :  { %v68_v37 = vmul.f32 %v1002_v30, %v67_v35  ;;  %v74_v38 = vmul.f32 %v1004_v36, %v62_v31  ;;  %vm80_vm5 = vweird.f32 %v1004_v36 }
 0x106   :  { %vm81_vm7 = vmor %vm79_vm6, %vm80_vm5 }
 0x107   :  { %v72_v40 = vsel %vm71_vm4, %v1002_v30, %v68_v37  ;;  %v75_v41 = vmul.f32 %v1004_v36, %v74_v38 }
 0x108   :  { %v83_v42 = vmul.f32 %v72_v40, %v49_v13 }
 0x109   :  { %v76_v44 = vmul.f32 0.5, %v75_v41 }
 0x10a   :  { %v86_v45 = vmul.f32 %v992_v39, %v83_v42 }
 0x10b   :  { %v77_v46 = vsub.f32 1.5, %v76_v44 }
 0x10c   :  { %v89_v47 = vadd.f32 %v993_v43, %v86_v45 }
 0x10d   :  { %v78_v48 = vmul.f32 %v1004_v36, %v77_v46 }
 0x10e   :  { %921 = vmatmul.msk.f32.vlgmr.msra.gmra.mxu1 %vm33_vm0, %v89_v47 }
 0x10f   :  { %v82_v49 = vsel %vm81_vm7, %v1004_v36, %v78_v48 }
 0x110   :  { %v84_v50 = vmul.f32 %v82_v49, %v50_v18 }
 0x112   :  { %v87_v51 = vmul.f32 %v992_v39, %v84_v50 }
 0x114   :  { %v90_v52 = vadd.f32 %v993_v43, %v87_v51 }
 0x116   :  { %922 = vmatmul.msk.f32.gmra.mxu1 %vm33_vm0, %v90_v52 }
 0x18b   :  { %v1161_v53 = vpop.f32.mrf.mxu1 }
 0x193   :  { %v1163_v54 = vpop.f32.mrf.mxu1 }
 0x194   :  { %142 = vrot.lane.b32.xlu2 %v1163_v54, %s1068_s11  ;;  %v1189_v13 = vpack.i.bf16 %v1161_v53, %v1163_v54 }
 0x19c   :  { %140 = vrot.lane.b32.xlu2 %v1161_v53, %s1068_s11 }
 0x1ee   :  { %v143_v55 = vpop.permute.xlu2 %142 }
 0x1ef   :  { %923 = vmatpush.xpose.msk.msrb.mxu1 %vm144_vm8, %v143_v55 }
 0x1f6   :  { %v141_v56 = vpop.permute.xlu2 %140 }
 0x1f7   :  { %924 = vmatpush.xpose.msk.msrb.mxu1 %vm144_vm8, %v141_v56 }
 0x1fa   :  { %925 = vmatmul.msk.f32.vlgmr.msrb.gmra.mxu1 %vm144_vm8, %v1161_v53 }
 0x202   :  { %926 = vmatmul.msk.f32.gmra.mxu1 %vm144_vm8, %v1163_v54 }
 0x277   :  { %v170_v63 = vpop.f32.mrf.mxu1 }
 0x278   :  { %v176_v3 = vmul.f32 0.17677669, %v170_v63 }
 0x27a   :  { %v178_v5 = vsel %vm1173_vm11, %v176_v3, -1e+30 }
 0x27b   :  { %v181_v6 = vsel %vm180_vm12, %v178_v5, -inf }
 0x27c   :  { %182 = vmax.xlane.f32.xlu0 %v181_v6 }
 0x27f   :  { %v173_v7 = vpop.f32.mrf.mxu1 }
 0x280   :  { %v177_v9 = vmul.f32 0.17677669, %v173_v7 }
 0x282   :  { %v179_v11 = vsel %vm1180_vm15, %v177_v9, -1e+30 }
 0x283   :  { %v184_v12 = vsel %vm180_vm12, %v179_v11, -inf }
 0x284   :  { %185 = vmax.xlane.f32.xlu1 %v184_v12 }
 0x29d   :  { %973 = vrot.lane.b32.xlu1 %v1189_v13, %s1069_s12 }
 0x2a5   :  { %301 = vrot.lane.b32.xlu1 %v1161_v53, %s1070_s13 }
 0x2ad   :  { %299 = vrot.lane.b32.xlu1 %v1163_v54, %s1071_s14 }
 0x2ef   :  { %v183_v14 = vpop.xlane.xlu0 %182 }
 0x2f0   :  { %v187_v15 = vsub.f32 %v178_v5, %v183_v14 }
 0x2f2   :  { %v189_v16 = vmul.f32 1.442695, %v187_v15 }
 0x2f4   :  { %1005 = vpow2.f32 %v189_v16 }
 0x2f7   :  { %v186_v17 = vpop.xlane.xlu1 %185 }
 0x2f8   :  { %v188_v18 = vsub.f32 %v179_v11, %v186_v17 }
 0x2fa   :  { %v1006_v19 = vpop.eup %1005  ;;  %v191_v20 = vmul.f32 1.442695, %v188_v18 }
 0x2fb   :  { %v193_v21 = vsel %vm180_vm12, %v1006_v19, 0.0 }
 0x2fc   :  { %1007 = vpow2.f32 %v191_v20  ;;  %194 = vadd.xlane.f32.xlu2 %v193_v21 }
 0x302   :  { %v1008_v22 = vpop.eup %1007 }
 0x303   :  { %v196_v23 = vsel %vm180_vm12, %v1008_v22, 0.0 }
 0x304   :  { %197 = vadd.xlane.f32.xlu0 %v196_v23 }
 0x30f   :  { %v974_v24 = vpop.permute.xlu1 %973 }
 0x310   :  { %v975_v25 = vunpack.i.l.bf16 %v974_v24  ;;  %v976_v26 = vunpack.i.h.bf16 %v974_v24 }
 0x312   :  { %255 = vmatpush.msra.mxu2 %v975_v25 }
 0x314   :  { %256 = vmatpush.msra.mxu2 %v976_v26 }
 0x317   :  { %v302_v55 = vpop.permute.xlu1 %301 }
 0x318   :  { %303 = vrot.lane.b32.xlu0 %v1163_v54, %s1070_s13 }
 0x31f   :  { %v300_v59 = vpop.permute.xlu1 %299 }
 0x320   :  { %297 = vrot.lane.b32.xlu0 %v1161_v53, %s1071_s14 }
 0x36f   :  { %v195_v28 = vpop.xlane.xlu2 %194 }
 0x370   :  { %1009 = vrcp.f32 %v195_v28  ;;  %v210_v33 = vand.u32 2147483648, %v195_v28  ;;  %v208_v35 = vand.u32 2147483647, %v195_v28  ;;  %vm204_vm2 = vweird.f32 %v195_v28 }
 0x372   :  { %v211_v38 = vor.u32 1.1754944e-38, %v210_v33  ;;  %vm209_vm4 = vcmp.eq.f32.partialorder %v208_v35, 8.507059e+37 }
 0x376   :  { %v1010_v29 = vpop.eup %1009 }
 0x377   :  { %v200_v30 = vmul.f32 %v1010_v29, %v195_v28  ;;  %v198_v31 = vpop.xlane.xlu0 %197  ;;  %vm205_vm1 = vweird.f32 %v1010_v29 }
 0x378   :  { %1011 = vrcp.f32 %v198_v31  ;;  %vm206_vm3 = vmor %vm204_vm2, %vm205_vm1  ;;  %v225_v44 = vand.u32 2147483648, %v198_v31  ;;  %v223_v46 = vand.u32 2147483647, %v198_v31  ;;  %vm219_vm6 = vweird.f32 %v198_v31 }
 0x379   :  { %v201_v32 = vsub.f32 1.0, %v200_v30 }
 0x37a   :  { %v226_v48 = vor.u32 1.1754944e-38, %v225_v44  ;;  %vm224_vm9 = vcmp.eq.f32.partialorder %v223_v46, 8.507059e+37 }
 0x37b   :  { %v202_v34 = vmul.f32 %v1010_v29, %v201_v32 }
 0x37d   :  { %v203_v36 = vadd.f32 %v1010_v29, %v202_v34 }
 0x37e   :  { %v1012_v37 = vpop.eup %1011 }
 0x37f   :  { %v215_v39 = vmul.f32 %v1012_v37, %v198_v31  ;;  %v207_v40 = vsel %vm206_vm3, %v1010_v29, %v203_v36  ;;  %vm220_vm5 = vweird.f32 %v1012_v37 }
 0x380   :  { %v212_v41 = vsel %vm209_vm4, %v211_v38, %v207_v40  ;;  %vm221_vm7 = vmor %vm219_vm6, %vm220_vm5 }
 0x381   :  { %v216_v42 = vsub.f32 1.0, %v215_v39  ;;  %v213_v43 = vmul.f32 %v1006_v19, %v212_v41 }
 0x383   :  { %v217_v45 = vmul.f32 %v1012_v37, %v216_v42  ;;  %927 = vmatmul.msk.f32.vlgmr.msra.gmra.mxu2 %vm180_vm12, %v213_v43 }
 0x385   :  { %v218_v47 = vadd.f32 %v1012_v37, %v217_v45 }
 0x387   :  { %v222_v49 = vsel %vm221_vm7, %v1012_v37, %v218_v47 }
 0x388   :  { %v227_v50 = vsel %vm224_vm9, %v226_v48, %v222_v49 }
 0x389   :  { %v228_v51 = vmul.f32 %v1008_v22, %v227_v50  ;;  %v423_v22 = vld [vmem:[%s1402_s2 + $0x8] sm:$0xff] }
 0x38a   :  { %v304_v52 = vpop.permute.xlu0 %303  ;;  %445 = vmatpush.msra.mxu0 %v423_v22 }
 0x38b   :  { %928 = vmatmul.msk.f32.gmra.mxu2 %vm180_vm12, %v228_v51  ;;  %931 = vmatpush.xpose.msk.msrb.mxu3 %vm144_vm8, %v304_v52 }
 0x38f   :  { %932 = vmatpush.xpose.msk.msrb.mxu3 %vm144_vm8, %v302_v55 }
 0x392   :  { %v298_v58 = vpop.permute.xlu0 %297 }
 0x406   :  { %v258_v56 = vpop.f32.mrf.mxu2 }
 0x407   :  { %929 = vmatmul.msk.f32.vlgmr.msra.gmra.mxu3 %vm144_vm8, %v258_v56 }
 0x40e   :  { %v261_v57 = vpop.f32.mrf.mxu2 }
 0x40f   :  { %930 = vmatmul.msk.f32.gmra.mxu3 %vm144_vm8, %v261_v57 }
 0x417   :  { %933 = vmatmul.msk.f32.vlgmr.msrb.gmra.mxu3 %vm144_vm8, %v298_v58 }
 0x41f   :  { %934 = vmatmul.msk.f32.gmra.mxu3 %vm144_vm8, %v300_v59 }
 0x48a   :  { %v1209_v60 = vpop.f32.mrf.mxu3 }
 0x492   :  { %v1211_v61 = vpop.f32.mrf.mxu3 }
 0x49a   :  { %v330_v62 = vpop.f32.mrf.mxu3 }
 0x49b   :  { %v336_v63 = vmul.f32 0.17677669, %v330_v62 }
 0x49d   :  { %v338_v3 = vsel %vm1173_vm11, %v336_v63, -1e+30 }
 0x49e   :  { %v340_v4 = vsel %vm180_vm12, %v338_v3, -inf }
 0x49f   :  { %341 = vmax.xlane.f32.xlu2 %v340_v4 }
 0x4a2   :  { %v333_v5 = vpop.f32.mrf.mxu3 }
 0x4a3   :  { %v337_v6 = vmul.f32 0.17677669, %v333_v5 }
 0x4a5   :  { %v339_v7 = vsel %vm1180_vm15, %v337_v6, -1e+30 }
 0x4a6   :  { %v343_v9 = vsel %vm180_vm12, %v339_v7, -inf }
 0x4a7   :  { %344 = vmax.xlane.f32.xlu0 %v343_v9 }
 0x4bb   :  { %459 = vrot.lane.b32.xlu0 %v1161_v53, %s1072_s17 }
 0x4c3   :  { %613 = vrot.lane.b32.xlu0 %v1161_v53, %s1073_s18 }
 0x512   :  { %v342_v11 = vpop.xlane.xlu2 %341 }
 0x513   :  { %v346_v12 = vsub.f32 %v338_v3, %v342_v11  ;;  %v994_v11 = vld [vmem:[%s1405_s5 + $0x1] ss:$0 sm:$0xff] }
 0x515   :  { %v348_v14 = vmul.f32 1.442695, %v346_v12  ;;  %v295_v12 = vadd.f32 %v994_v11, %v1209_v60 }
 0x517   :  { %1013 = vpow2.f32 %v348_v14 }
 0x51a   :  { %v345_v15 = vpop.xlane.xlu0 %344 }
 0x51b   :  { %v347_v16 = vsub.f32 %v339_v7, %v345_v15 }
 0x51d   :  { %v1014_v17 = vpop.eup %1013  ;;  %v350_v18 = vmul.f32 1.442695, %v347_v16 }
 0x51e   :  { %v352_v19 = vsel %vm180_vm12, %v1014_v17, 0.0 }
 0x51f   :  { %1015 = vpow2.f32 %v350_v18  ;;  %353 = vadd.xlane.f32.xlu1 %v352_v19  ;;  %v296_v19 = vadd.f32 %v994_v11, %v1211_v61 }
 0x525   :  { %v1016_v20 = vpop.eup %1015 }
 0x526   :  { %v355_v21 = vsel %vm180_vm12, %v1016_v20, 0.0 }
 0x527   :  { %356 = vadd.xlane.f32.xlu2 %v355_v21 }
 0x52d   :  { %v460_v49 = vpop.permute.xlu0 %459 }
 0x535   :  { %v614_v3 = vpop.permute.xlu0 %613 }
 0x538   :  { %619 = vrot.lane.b32.xlu1 %v1163_v54, %s1074_s19 }
 0x53f   :  { %978 = vrot.lane.b32.xlu2 %v1189_v13, %s1075_s20 }
 0x547   :  { %461 = vrot.lane.b32.xlu2 %v1163_v54, %s1072_s17 }
 0x54f   :  { %455 = vrot.lane.b32.xlu2 %v1161_v53, %s1076_s21 }
 0x557   :  { %617 = vrot.lane.b32.xlu2 %v1161_v53, %s1074_s19 }
 0x55f   :  { %457 = vrot.lane.b32.xlu2 %v1163_v54, %s1076_s21 }
 0x567   :  { %615 = vrot.lane.b32.xlu2 %v1163_v54, %s1073_s18 }
 0x592   :  { %v354_v23 = vpop.xlane.xlu1 %353 }
 0x593   :  { %1017 = vrcp.f32 %v354_v23  ;;  %v369_v28 = vand.u32 2147483648, %v354_v23  ;;  %v367_v53 = vand.u32 2147483647, %v354_v23  ;;  %vm363_vm13 = vweird.f32 %v354_v23 }
 0x595   :  { %v370_v54 = vor.u32 1.1754944e-38, %v369_v28  ;;  %vm368_vm1 = vcmp.eq.f32.partialorder %v367_v53, 8.507059e+37 }
 0x599   :  { %v1018_v24 = vpop.eup %1017 }
 0x59a   :  { %v359_v25 = vmul.f32 %v1018_v24, %v354_v23  ;;  %v357_v26 = vpop.xlane.xlu2 %356  ;;  %vm364_vm10 = vweird.f32 %v1018_v24 }
 0x59b   :  { %1019 = vrcp.f32 %v357_v26  ;;  %vm365_vm14 = vmor %vm363_vm13, %vm364_vm10  ;;  %v384_v38 = vand.u32 2147483648, %v357_v26  ;;  %v382_v42 = vand.u32 2147483647, %v357_v26  ;;  %vm378_vm3 = vweird.f32 %v357_v26 }
 0x59c   :  { %v360_v27 = vsub.f32 1.0, %v359_v25 }
 0x59d   :  { %v385_v44 = vor.u32 1.1754944e-38, %v384_v38  ;;  %vm383_vm5 = vcmp.eq.f32.partialorder %v382_v42, 8.507059e+37 }
 0x59e   :  { %v361_v29 = vmul.f32 %v1018_v24, %v360_v27 }
 0x5a0   :  { %v362_v30 = vadd.f32 %v1018_v24, %v361_v29 }
 0x5a1   :  { %v1020_v31 = vpop.eup %1019 }
 0x5a2   :  { %v374_v32 = vmul.f32 %v1020_v31, %v357_v26  ;;  %v979_v33 = vpop.permute.xlu2 %978  ;;  %v366_v34 = vsel %vm365_vm14, %v1018_v24, %v362_v30  ;;  %vm379_vm2 = vweird.f32 %v1020_v31 }
 0x5a3   :  { %v980_v35 = vunpack.i.l.bf16 %v979_v33  ;;  %v371_v36 = vsel %vm368_vm1, %v370_v54, %v366_v34  ;;  %v981_v39 = vunpack.i.h.bf16 %v979_v33  ;;  %vm380_vm4 = vmor %vm378_vm3, %vm379_vm2 }
 0x5a4   :  { %v375_v37 = vsub.f32 1.0, %v374_v32  ;;  %v372_v41 = vmul.f32 %v1014_v17, %v371_v36 }
 0x5a5   :  { %414 = vmatpush.msrb.mxu2 %v980_v35 }
 0x5a6   :  { %v376_v40 = vmul.f32 %v1020_v31, %v375_v37 }
 0x5a7   :  { %415 = vmatpush.msrb.mxu2 %v981_v39 }
 0x5a8   :  { %935 = vmatmul.msk.f32.vlgmr.msrb.gmra.mxu2 %vm180_vm12, %v372_v41  ;;  %v377_v43 = vadd.f32 %v1020_v31, %v376_v40 }
 0x5aa   :  { %v620_v45 = vpop.permute.xlu1 %619  ;;  %v462_v46 = vpop.permute.xlu2 %461  ;;  %v381_v47 = vsel %vm380_vm4, %v1020_v31, %v377_v43 }
 0x5ab   :  { %939 = vmatpush.xpose.msk.msra.mxu1 %vm144_vm8, %v462_v46  ;;  %947 = vmatpush.xpose.msk.msrb.mxu0 %vm144_vm8, %v620_v45  ;;  %v386_v48 = vsel %vm383_vm5, %v385_v44, %v381_v47 }
 0x5ac   :  { %v387_v50 = vmul.f32 %v1016_v20, %v386_v48 }
 0x5af   :  { %940 = vmatpush.xpose.msk.msra.mxu1 %vm144_vm8, %v460_v49 }
 0x5b0   :  { %936 = vmatmul.msk.f32.gmra.mxu2 %vm180_vm12, %v387_v50 }
 0x5b2   :  { %v456_v51 = vpop.permute.xlu2 %455 }
 0x5b3   :  { %941 = vmatmul.msk.f32.vlgmr.msra.gmra.mxu1 %vm144_vm8, %v456_v51 }
 0x5ba   :  { %v618_v52 = vpop.permute.xlu2 %617 }
 0x5bb   :  { %948 = vmatpush.xpose.msk.msrb.mxu0 %vm144_vm8, %v618_v52 }
 0x5c2   :  { %v458_v55 = vpop.permute.xlu2 %457 }
 0x5c3   :  { %942 = vmatmul.msk.f32.gmra.mxu1 %vm144_vm8, %v458_v55 }
 0x5ca   :  { %v616_v6 = vpop.permute.xlu2 %615 }
 0x62b   :  { %v417_v56 = vpop.f32.mrf.mxu2 }
 0x62c   :  { %937 = vmatmul.msk.f32.vlgmr.msra.gmra.mxu0 %vm144_vm8, %v417_v56 }
 0x630   :  { %v488_v57 = vpop.f32.mrf.mxu1 }
 0x631   :  { %v494_v58 = vmul.f32 0.17677669, %v488_v57 }
 0x633   :  { %v420_v59 = vpop.f32.mrf.mxu2  ;;  %v496_v62 = vsel %vm1173_vm11, %v494_v58, -1e+30 }
 0x634   :  { %938 = vmatmul.msk.f32.gmra.mxu0 %vm144_vm8, %v420_v59  ;;  %v498_v63 = vsel %vm180_vm12, %v496_v62, -inf }
 0x635   :  { %499 = vmax.xlane.f32.xlu0 %v498_v63 }
 0x63c   :  { %949 = vmatmul.msk.f32.vlgmr.msrb.gmra.mxu0 %vm144_vm8, %v614_v3 }
 0x640   :  { %v491_v4 = vpop.f32.mrf.mxu1 }
 0x641   :  { %v495_v5 = vmul.f32 0.17677669, %v491_v4 }
 0x643   :  { %v497_v7 = vsel %vm1180_vm15, %v495_v5, -1e+30 }
 0x644   :  { %950 = vmatmul.msk.f32.gmra.mxu0 %vm144_vm8, %v616_v6  ;;  %v501_v9 = vsel %vm180_vm12, %v497_v7, -inf }
 0x645   :  { %502 = vmax.xlane.f32.xlu1 %v501_v9 }
 0x6a8   :  { %v500_v14 = vpop.xlane.xlu0 %499 }
 0x6a9   :  { %v504_v15 = vsub.f32 %v496_v62, %v500_v14  ;;  %v447_v16 = vpop.f32.mrf.mxu0  ;;  %v581_v14 = vld [vmem:[%s1402_s2 + $0x10] sm:$0xff] }
 0x6aa   :  { %v1255_v17 = vadd.f32 %v447_v16, %v295_v12  ;;  %603 = vmatpush.msra.mxu2 %v581_v14  ;;  %v739_v16 = vld [vmem:[%s1402_s2 + $0x18] sm:$0xff]  ;;  %v873_v14 = vld [vmem:[%s1404_s4 + $0x70] sm:$0xff] }
 0x6ab   :  { %v506_v18 = vmul.f32 1.442695, %v504_v15 }
 0x6ad   :  { %1021 = vpow2.f32 %v506_v18 }
 0x6b1   :  { %v450_v20 = vpop.f32.mrf.mxu0 }
 0x6b2   :  { %v1258_v21 = vadd.f32 %v450_v20, %v296_v19 }
 0x6b3   :  { %v1022_v22 = vpop.eup %1021 }
 0x6b4   :  { %v510_v23 = vsel %vm180_vm12, %v1022_v22, 0.0 }
 0x6b5   :  { %511 = vadd.xlane.f32.xlu1 %v510_v23 }
 0x6b8   :  { %v503_v24 = vpop.xlane.xlu1 %502 }
 0x6b9   :  { %v505_v25 = vsub.f32 %v497_v7, %v503_v24  ;;  %v646_v26 = vpop.f32.mrf.mxu0 }
 0x6ba   :  { %v652_v60 = vmul.f32 0.17677669, %v646_v26 }
 0x6bb   :  { %v508_v27 = vmul.f32 1.442695, %v505_v25 }
 0x6bc   :  { %v654_v28 = vsel %vm1173_vm11, %v652_v60, -1e+30 }
 0x6bd   :  { %1023 = vpow2.f32 %v508_v27  ;;  %v656_v29 = vsel %vm180_vm12, %v654_v28, -inf }
 0x6be   :  { %657 = vmax.xlane.f32.xlu2 %v656_v29 }
 0x6c1   :  { %v649_v61 = vpop.f32.mrf.mxu0 }
 0x6c2   :  { %v653_v53 = vmul.f32 0.17677669, %v649_v61 }
 0x6c3   :  { %v1024_v30 = vpop.eup %1023 }
 0x6c4   :  { %v513_v31 = vsel %vm180_vm12, %v1024_v30, 0.0  ;;  %v655_v54 = vsel %vm1180_vm15, %v653_v53, -1e+30 }
 0x6c5   :  { %v659_v32 = vsel %vm180_vm12, %v655_v54, -inf }
 0x6c6   :  { %514 = vadd.xlane.f32.xlu2 %v513_v31  ;;  %660 = vmax.xlane.f32.xlu0 %v659_v32 }
 0x6de   :  { %983 = vrot.lane.b32.xlu2 %v1189_v13, %s1077_s25 }
 0x728   :  { %v512_v1 = vpop.xlane.xlu1 %511 }
 0x729   :  { %1025 = vrcp.f32 %v512_v1  ;;  %v527_v43 = vand.u32 2147483648, %v512_v1  ;;  %vm521_vm15 = vweird.f32 %v512_v1  ;;  %v525_v45 = vand.u32 2147483647, %v512_v1 }
 0x72b   :  { %v528_v49 = vor.u32 1.1754944e-38, %v527_v43  ;;  %vm526_vm7 = vcmp.eq.f32.partialorder %v525_v45, 8.507059e+37 }
 0x72f   :  { %v1026_v33 = vpop.eup %1025 }
 0x730   :  { %v517_v34 = vmul.f32 %v1026_v33, %v512_v1  ;;  %vm522_vm11 = vweird.f32 %v1026_v33 }
 0x731   :  { %v658_v35 = vpop.xlane.xlu2 %657  ;;  %vm523_vm6 = vmor %vm521_vm15, %vm522_vm11 }
 0x732   :  { %v518_v36 = vsub.f32 1.0, %v517_v34  ;;  %v662_v37 = vsub.f32 %v654_v28, %v658_v35 }
 0x734   :  { %v664_v38 = vmul.f32 1.442695, %v662_v37  ;;  %v519_v39 = vmul.f32 %v1026_v33, %v518_v36 }
 0x736   :  { %1027 = vpow2.f32 %v664_v38  ;;  %v520_v41 = vadd.f32 %v1026_v33, %v519_v39 }
 0x738   :  { %v524_v48 = vsel %vm523_vm6, %v1026_v33, %v520_v41 }
 0x739   :  { %v515_v40 = vpop.xlane.xlu2 %514  ;;  %v661_v8 = vpop.xlane.xlu0 %660  ;;  %v529_v51 = vsel %vm526_vm7, %v528_v49, %v524_v48 }
 0x73a   :  { %1029 = vrcp.f32 %v515_v40  ;;  %v663_v42 = vsub.f32 %v655_v54, %v661_v8  ;;  %v542_v59 = vand.u32 2147483648, %v515_v40  ;;  %v530_v63 = vmul.f32 %v1022_v22, %v529_v51 }
 0x73b   :  { %v540_v5 = vand.u32 2147483647, %v515_v40  ;;  %vm536_vm10 = vweird.f32 %v515_v40 }
 0x73c   :  { %v1269_v44 = vpop.eup %1027  ;;  %v666_v46 = vmul.f32 1.442695, %v663_v42  ;;  %v543_v7 = vor.u32 1.1754944e-38, %v542_v59 }
 0x73d   :  { %v668_v47 = vsel %vm180_vm12, %v1269_v44, 0.0  ;;  %vm541_vm14 = vcmp.eq.f32.partialorder %v540_v5, 8.507059e+37  ;;  %v824_v5 = vld [vmem:[%s1403_s3 + $0x8] sm:$0xff] }
 0x73e   :  { %1031 = vpow2.f32 %v666_v46  ;;  %669 = vadd.xlane.f32.xlu0 %v668_v47 }
 0x740   :  { %v1030_v50 = vpop.eup %1029 }
 0x741   :  { %v532_v52 = vmul.f32 %v1030_v50, %v515_v40  ;;  %v984_v55 = vpop.permute.xlu2 %983  ;;  %vm537_vm9 = vweird.f32 %v1030_v50 }
 0x742   :  { %v985_v56 = vunpack.i.l.bf16 %v984_v55  ;;  %v986_v62 = vunpack.i.h.bf16 %v984_v55  ;;  %vm538_vm13 = vmor %vm536_vm10, %vm537_vm9 }
 0x743   :  { %v533_v57 = vsub.f32 1.0, %v532_v52 }
 0x744   :  { %v1273_v58 = vpop.eup %1031  ;;  %572 = vmatpush.msra.mxu3 %v985_v56 }
 0x745   :  { %v534_v3 = vmul.f32 %v1030_v50, %v533_v57  ;;  %v671_v4 = vsel %vm180_vm12, %v1273_v58, 0.0 }
 0x746   :  { %573 = vmatpush.msra.mxu3 %v986_v62  ;;  %672 = vadd.xlane.f32.xlu1 %v671_v4  ;;  %v825_v4 = vld [vmem:[%s1403_s3 + $0x10] sm:$0xff] }
 0x747   :  { %943 = vmatmul.msk.f32.vlgmr.msra.gmra.mxu3 %vm180_vm12, %v530_v63  ;;  %v535_v6 = vadd.f32 %v1030_v50, %v534_v3  ;;  %v826_v3 = vld [vmem:[%s1403_s3 + $0x18] sm:$0xff] }
 0x748   :  { %761 = vmatpush.msrb.mxu3 %v739_v16  ;;  %846 = vmatpush.msrb.mxu2 %v826_v3 }
 0x749   :  { %v539_v9 = vsel %vm538_vm13, %v1030_v50, %v535_v6  ;;  %v823_v6 = vld [vmem:[%s1403_s3] sm:$0xff] }
 0x74a   :  { %v544_v11 = vsel %vm541_vm14, %v543_v7, %v539_v9  ;;  %847 = vmatpush.msrb.mxu2 %v825_v4 }
 0x74b   :  { %v545_v12 = vmul.f32 %v1024_v30, %v544_v11 }
 0x74c   :  { %848 = vmatpush.msrb.mxu2 %v824_v5 }
 0x74e   :  { %849 = vmatpush.msrb.mxu2 %v823_v6 }
 0x74f   :  { %944 = vmatmul.msk.f32.gmra.mxu3 %vm180_vm12, %v545_v12  ;;  %v874_v12 = vld [vmem:[%s1404_s4 + $0x78] sm:$0xff] }
 0x750   :  { %876 = vmatpush.msra.mxu0 %v874_v12 }
 0x752   :  { %988 = vrot.lane.b32.xlu0 %v1189_v13, %s1078_s26  ;;  %877 = vmatpush.msra.mxu0 %v873_v14  ;;  %s909_s26 = sshll.u32 %s1406_s6, 4  ;;  %s910_s26 = int_to_ptr.hbm [resolvable:$true] %s909_s26 }
 0x7b1   :  { %v670_v15 = vpop.xlane.xlu0 %669 }
 0x7b2   :  { %1033 = vrcp.f32 %v670_v15  ;;  %v685_v24 = vand.u32 2147483648, %v670_v15  ;;  %vm679_vm2 = vweird.f32 %v670_v15  ;;  %v683_v26 = vand.u32 2147483647, %v670_v15 }
 0x7b4   :  { %v686_v28 = vor.u32 1.1754944e-38, %v685_v24  ;;  %vm684_vm4 = vcmp.eq.f32.partialorder %v683_v26, 8.507059e+37  ;;  %v869_v24 = vld [vmem:[%s1404_s4 + $0x50] sm:$0xff] }
 0x7b8   :  { %v1034_v18 = vpop.eup %1033 }
 0x7b9   :  { %v675_v19 = vmul.f32 %v1034_v18, %v670_v15  ;;  %v673_v20 = vpop.xlane.xlu1 %672  ;;  %vm680_vm1 = vweird.f32 %v1034_v18  ;;  %v872_v15 = vld [vmem:[%s1404_s4 + $0x68] sm:$0xff] }
 0x7ba   :  { %1035 = vrcp.f32 %v673_v20  ;;  %vm681_vm3 = vmor %vm679_vm2, %vm680_vm1  ;;  %v700_v54 = vand.u32 2147483648, %v673_v20  ;;  %vm694_vm11 = vweird.f32 %v673_v20  ;;  %v698_v34 = vand.u32 2147483647, %v673_v20  ;;  %878 = vmatpush.msra.mxu0 %v872_v15 }
 0x7bb   :  { %v676_v22 = vsub.f32 1.0, %v675_v19  ;;  %v871_v19 = vld [vmem:[%s1404_s4 + $0x60] sm:$0xff] }
 0x7bc   :  { %v701_v37 = vor.u32 1.1754944e-38, %v700_v54  ;;  %vm699_vm6 = vcmp.eq.f32.partialorder %v698_v34, 8.507059e+37  ;;  %879 = vmatpush.msra.mxu0 %v871_v19  ;;  %v864_v34 = vld [vmem:[%s1404_s4 + $0x28] sm:$0xff] }
 0x7bd   :  { %v677_v23 = vmul.f32 %v1034_v18, %v676_v22 }
 0x7bf   :  { %v678_v13 = vadd.f32 %v1034_v18, %v677_v23  ;;  %v870_v23 = vld [vmem:[%s1404_s4 + $0x58] sm:$0xff] }
 0x7c0   :  { %v1036_v25 = vpop.eup %1035  ;;  %880 = vmatpush.msra.mxu0 %v870_v23 }
 0x7c1   :  { %v690_v60 = vmul.f32 %v1036_v25, %v673_v20  ;;  %v682_v27 = vsel %vm681_vm3, %v1034_v18, %v678_v13  ;;  %vm695_vm5 = vweird.f32 %v1036_v25 }
 0x7c2   :  { %v687_v53 = vsel %vm684_vm4, %v686_v28, %v682_v27  ;;  %vm696_vm15 = vmor %vm694_vm11, %vm695_vm5  ;;  %881 = vmatpush.msra.mxu0 %v869_v24 }
 0x7c3   :  { %v691_v29 = vsub.f32 1.0, %v690_v60  ;;  %v688_v33 = vmul.f32 %v1269_v44, %v687_v53  ;;  %v867_v60 = vld [vmem:[%s1404_s4 + $0x40] sm:$0xff] }
 0x7c4   :  { %v989_v61 = vpop.permute.xlu0 %988 }
 0x7c5   :  { %v692_v30 = vmul.f32 %v1036_v25, %v691_v29  ;;  %v990_v31 = vunpack.i.l.bf16 %v989_v61  ;;  %v991_v32 = vunpack.i.h.bf16 %v989_v61  ;;  %v866_v29 = vld [vmem:[%s1404_s4 + $0x38] sm:$0xff] }
 0x7c7   :  { %730 = vmatpush.msrb.mxu1 %v990_v31  ;;  %v693_v1 = vadd.f32 %v1036_v25, %v692_v30  ;;  %v995_v30 = vld [vmem:[%s1405_s5 + $0x5] ss:$0 sm:$0xff]  ;;  %v865_v31 = vld [vmem:[%s1404_s4 + $0x30] sm:$0xff] }
 0x7c9   :  { %731 = vmatpush.msrb.mxu1 %v991_v32  ;;  %v697_v36 = vsel %vm696_vm15, %v1036_v25, %v693_v1 }
 0x7ca   :  { %v575_v35 = vpop.f32.mrf.mxu3  ;;  %951 = vmatmul.msk.f32.vlgmr.msrb.gmra.mxu1 %vm180_vm12, %v688_v33  ;;  %v702_v38 = vsel %vm699_vm6, %v701_v37, %v697_v36  ;;  %v996_v33 = vld [vmem:[%s1405_s5 + $0x6] ss:$0 sm:$0xff] }
 0x7cb   :  { %945 = vmatmul.msk.f32.vlgmr.msra.gmra.mxu2 %vm144_vm8, %v575_v35  ;;  %v703_v39 = vmul.f32 %v1273_v58, %v702_v38  ;;  %v863_v37 = vld [vmem:[%s1404_s4 + $0x20] sm:$0xff] }
 0x7d2   :  { %v578_v40 = vpop.f32.mrf.mxu3  ;;  %952 = vmatmul.msk.f32.gmra.mxu1 %vm180_vm12, %v703_v39 }
 0x7d3   :  { %946 = vmatmul.msk.f32.gmra.mxu2 %vm144_vm8, %v578_v40  ;;  %v862_v40 = vld [vmem:[%s1404_s4 + $0x18] sm:$0xff] }
 0x847   :  { %v733_v8 = vpop.f32.mrf.mxu1 }
 0x848   :  { %953 = vmatmul.msk.f32.vlgmr.msrb.gmra.mxu3 %vm144_vm8, %v733_v8 }
 0x84e   :  { %v605_v42 = vpop.f32.mrf.mxu2 }
 0x84f   :  { %v736_v41 = vpop.f32.mrf.mxu1  ;;  %v611_v43 = vadd.f32 %v605_v42, %v1255_v17 }
 0x850   :  { %954 = vmatmul.msk.f32.gmra.mxu3 %vm144_vm8, %v736_v41 }
 0x856   :  { %v608_v47 = vpop.f32.mrf.mxu2 }
 0x857   :  { %v612_v49 = vadd.f32 %v608_v47, %v1258_v21  ;;  %v860_v47 = vld [vmem:[%s1404_s4 + $0x8] sm:$0xff] }
 0x8cb   :  { %v763_v44 = vpop.f32.mrf.mxu3 }
 0x8cc   :  { %v769_v45 = vadd.f32 %v763_v44, %v611_v43 }
 0x8ce   :  { %v1296_v46 = vadd.f32 %v769_v45, %v1120_v0  ;;  %v861_v45 = vld [vmem:[%s1404_s4 + $0x10] sm:$0xff] }
 0x8d0   :  { %v773_v48 = vsel %vm33_vm0, %v1296_v46, 0.0 }
 0x8d1   :  { %774 = vadd.xlane.f32.xlu1 %v773_v48  ;;  %v859_v48 = vld [vmem:[%s1404_s4] sm:$0xff] }
 0x8d3   :  { %v766_v50 = vpop.f32.mrf.mxu3 }
 0x8d4   :  { %v770_v51 = vadd.f32 %v766_v50, %v612_v49  ;;  %v997_v49 = vld [vmem:[%s1405_s5] ss:$0 sm:$0xff] }
 0x8d6   :  { %v1302_v52 = vadd.f32 %v770_v51, %v1127_v2 }
 0x8d8   :  { %v776_v17 = vsel %vm33_vm0, %v1302_v52, 0.0 }
 0x8d9   :  { %777 = vadd.xlane.f32.xlu1 %v776_v17 }
 0x944   :  { %v775_v55 = vpop.xlane.xlu1 %774 }
 0x945   :  { %v779_v0 = vmul.f32 %v775_v55, %v1131_v10 }
 0x947   :  { %v781_v56 = vsub.f32 %v1296_v46, %v779_v0 }
 0x949   :  { %v783_v57 = vmul.f32 %v781_v56, %v781_v56 }
 0x94b   :  { %v785_v58 = vsel %vm33_vm0, %v783_v57, 0.0  ;;  %v998_v57 = vld [vmem:[%s1405_s5 + $0x2] ss:$0 sm:$0xff]  ;;  %s1080_s5 = smov 128  }
 0x94c   :  { %786 = vadd.xlane.f32.xlu1 %v785_v58  ;;  %v778_v59 = vpop.xlane.xlu1 %777 }
 0x94d   :  { %v780_v21 = vmul.f32 %v778_v59, %v1131_v10 }
 0x94f   :  { %v1311_v62 = vsub.f32 %v1302_v52, %v780_v21 }
 0x951   :  { %v784_v2 = vmul.f32 %v1311_v62, %v1311_v62 }
 0x953   :  { %v788_v63 = vsel %vm33_vm0, %v784_v2, 0.0 }
 0x954   :  { %789 = vadd.xlane.f32.xlu0 %v788_v63 }
 0x9bf   :  { %v787_v7 = vpop.xlane.xlu1 %786 }
 0x9c0   :  { %v791_v9 = vmul.f32 %v787_v7, %v1131_v10 }
 0x9c2   :  { %v793_v11 = vadd.f32 1e-05, %v791_v9 }
 0x9c4   :  { %1037 = vrsqrt.f32 %v793_v11  ;;  %vm801_vm12 = vweird.f32 %v793_v11 }
 0x9c7   :  { %v790_v16 = vpop.xlane.xlu0 %789 }
 0x9c8   :  { %v792_v18 = vmul.f32 %v790_v16, %v1131_v10  ;;  %v868_v10 = vld [vmem:[%s1404_s4 + $0x48] sm:$0xff]  ;;  %s1079_s4 = smov [#allocation2]  }
 0x9c9   :  { %882 = vmatpush.msra.mxu0 %v868_v10  ;;  %s907_s24 = sshll.u32 %s1079_s4, 4  ;;  %s908_s24 = int_to_ptr.vmem [resolvable:$true] %s907_s24 }
 0x9ca   :  { %v1038_v20 = vpop.eup %1037  ;;  %v794_v22 = vadd.f32 1e-05, %v792_v18 }
 0x9cb   :  { %v796_v13 = vmul.f32 %v1038_v20, %v793_v11  ;;  %vm802_vm8 = vweird.f32 %v1038_v20  ;;  %883 = vmatpush.msra.mxu0 %v867_v60 }
 0x9cc   :  { %1039 = vrsqrt.f32 %v794_v22  ;;  %vm803_vm7 = vmor %vm801_vm12, %vm802_vm8  ;;  %vm811_vm10 = vweird.f32 %v794_v22 }
 0x9cd   :  { %v797_v25 = vmul.f32 %v1038_v20, %v796_v13  ;;  %884 = vmatpush.msra.mxu0 %v866_v29 }
 0x9cf   :  { %v798_v26 = vmul.f32 0.5, %v797_v25  ;;  %885 = vmatpush.msra.mxu0 %v865_v31 }
 0x9d1   :  { %v799_v27 = vsub.f32 1.5, %v798_v26  ;;  %886 = vmatpush.msra.mxu0 %v864_v34 }
 0x9d2   :  { %v1040_v28 = vpop.eup %1039 }
 0x9d3   :  { %v800_v61 = vmul.f32 %v1038_v20, %v799_v27  ;;  %v806_v53 = vmul.f32 %v1040_v28, %v794_v22  ;;  %vm812_vm9 = vweird.f32 %v1040_v28  ;;  %887 = vmatpush.msra.mxu0 %v863_v37 }
 0x9d4   :  { %vm813_vm13 = vmor %vm811_vm10, %vm812_vm9 }
 0x9d5   :  { %v804_v54 = vsel %vm803_vm7, %v1038_v20, %v800_v61  ;;  %v807_v32 = vmul.f32 %v1040_v28, %v806_v53  ;;  %888 = vmatpush.msra.mxu0 %v862_v40 }
 0x9d6   :  { %v815_v1 = vmul.f32 %v804_v54, %v781_v56 }
 0x9d7   :  { %v808_v35 = vmul.f32 0.5, %v807_v32  ;;  %889 = vmatpush.msra.mxu0 %v861_v45 }
 0x9d8   :  { %v818_v36 = vmul.f32 %v995_v30, %v815_v1 }
 0x9d9   :  { %v809_v38 = vsub.f32 1.5, %v808_v35  ;;  %890 = vmatpush.msra.mxu0 %v860_v47 }
 0x9da   :  { %v821_v39 = vadd.f32 %v996_v33, %v818_v36 }
 0x9db   :  { %v810_v8 = vmul.f32 %v1040_v28, %v809_v38  ;;  %891 = vmatpush.msra.mxu0 %v859_v48 }
 0x9dc   :  { %955 = vmatmul.msk.f32.vlgmr.msrb.gmra.mxu2 %vm33_vm0, %v821_v39 }
 0x9dd   :  { %v814_v41 = vsel %vm813_vm13, %v1040_v28, %v810_v8 }
 0x9de   :  { %v816_v42 = vmul.f32 %v814_v41, %v1311_v62 }
 0x9e0   :  { %v819_v43 = vmul.f32 %v995_v30, %v816_v42 }
 0x9e2   :  { %v822_v44 = vadd.f32 %v996_v33, %v819_v43 }
 0x9e4   :  { %956 = vmatmul.msk.f32.gmra.mxu2 %vm33_vm0, %v822_v44 }
 0xa5f   :  { %v851_v50 = vpop.f32.mrf.mxu2 }
 0xa60   :  { %v852_v51 = vadd.f32 %v997_v49, %v851_v50 }
 0xa62   :  { %v857_v17 = vmax.f32 %v852_v51, 0.0 }
 0xa64   :  { %892 = vmatmul.f32.vlgmr.msra.gmra.mxu0 %v857_v17 }
 0xa67   :  { %v854_v55 = vpop.f32.mrf.mxu2 }
 0xa68   :  { %v855_v0 = vadd.f32 %v997_v49, %v854_v55 }
 0xa6a   :  { %v858_v56 = vmax.f32 %v855_v0, 0.0 }
 0xa6c   :  { %895 = vmatmul.f32.gmra.mxu0 %v858_v56 }
 0xae1   :  { %v893_v58 = vpop.f32.mrf.mxu0 }
 0xae2   :  { %v894_v59 = vadd.f32 %v998_v57, %v893_v58 }
 0xae4   :  { %v899_v21 = vadd.f32 %v894_v59, %v1296_v46 }
 0xae6   :  { %901 = vst.msk [vmem:[#allocation2] sm:$0xff] %vm33_vm0, %v899_v21 }
 0xae9   :  { %v896_v62 = vpop.f32.mrf.mxu0 }
 0xaea   :  { %v897_v2 = vadd.f32 %v998_v57, %v896_v62 }
 0xaec   :  { %v900_v63 = vadd.f32 %v897_v2, %v1302_v52 }
 0xaee   :  { %902 = vst.msk [vmem:[#allocation2 + $0x8] sm:$0xff] %vm33_vm0, %v900_v63 }
 0xaef   :  { %915 = dma.vmem_to_hbm [thread:$0]  %s908_s24, 256, %s910_s26, [#allocation3], %s1080_s5, %s1080_s5, %s1081_s27  }
 0xaf0   :  { %1065 = dma.done.wait [#allocation3], 256  }
 0xaf1   :  { %1066 = vsyncadd [#allocation3], 4294967040 }
 0xaf2   :  { %920 = vsyncpa [#allocation3], 1 }

</bundles_post_ra>
